<compile_context>
chip_gen: v5e
topology: v5e:2x2
jax: 0.10.0
libtpu: 0.0.40
codegen_flags: <defaults>
</compile_context>

<pallas_src>
import jax
import jax.numpy as jnp
from jax.experimental import pallas as pl
from jax.experimental.pallas import tpu as pltpu


def _detector_ke_kernel(xt_ref, st_ref, mu_ref, gt_ref, coef_ref, o_ref):
    # xt_ref:   (F, TN)    transposed tile of points (N on the lane axis)
    # st_ref:   (K*F, F)   St[j*F+g, f] = cov_inv_sqrt[j, f, g] / sqrt(2)
    # mu_ref:   (K*F, 1)   mu[j*F+g]    = (c_j @ S_j)[g] / sqrt(2)
    # gt_ref:   (K, K*F)   block-diagonal ones (segment-sum over g per center)
    # coef_ref: (K, 1)     prs_j * sqrt(det(cov_inv_j)) * exp(-threshold)
    # o_ref:    (1, TN)    log_likelihood - threshold   (lane-dense output)

    # y[j*F+g, n] = (S_j^T (x_n - c_j))[g] / sqrt(2)          (MXU, contraction F)
    y = jnp.dot(st_ref[...], xt_ref[...],
                preferred_element_type=jnp.float32) - mu_ref[...]        # (K*F, TN)

    # quad[j, n] = 0.5 * (x_n - c_j)^T cov_inv_j (x_n - c_j)  (MXU, contraction K*F)
    quad = jnp.dot(gt_ref[...], y * y,
                   preferred_element_type=jnp.float32)                   # (K, TN)
    d = -quad                                                            # = -0.5*sqdist

    # weighted, numerically-stable logsumexp over centers (sublane reduce over K)
    m = jnp.max(d, axis=0, keepdims=True)                                # (1, TN)
    s = jnp.sum(coef_ref[...] * jnp.exp(d - m), axis=0, keepdims=True)   # (1, TN)
    o_ref[...] = (m + jnp.log(s)).astype(o_ref.dtype)


def _round_up(x, m):
    return -(-x // m) * m


def detector_ke_forward(X, centers, cov_inv_sqrt, weight, threshold,
                        equal_clusters=True, tile_n=4096):
    """forward(X) = log_likelihood(X) - threshold, full_cov=True path."""
    X = jnp.asarray(X, jnp.float32)
    N, F = X.shape
    K = centers.shape[0]

    # ---- DetectorKe.refresh()  (parameter glue, plain JAX) ------------------
    if equal_clusters:
        w = jnp.abs(weight)
        prs = w / jnp.sum(w)
    else:
        prs = jax.nn.softmax(weight)
    cov_inv = jnp.einsum('kfg,khg->kfh', cov_inv_sqrt, cov_inv_sqrt)          # S @ S^T
    coef = prs * jnp.sqrt(jnp.linalg.det(cov_inv))                            # (K,)

    # fold threshold into the mixture coefficients: ll - thr = logsumexp(coef*e^{-thr}*e^d)
    thr = jnp.asarray(threshold, jnp.float32)
    coef_eff = (coef * jnp.exp(-thr)).reshape(K, 1).astype(jnp.float32)       # (K, 1)

    # ---- Cholesky-factor form with the -0.5 folded in (scale by 1/sqrt(2)) --
    inv_sqrt2 = jnp.float32(0.5) ** 0.5
    st = (jnp.transpose(cov_inv_sqrt, (0, 2, 1)).reshape(K * F, F)
          * inv_sqrt2).astype(jnp.float32)                                    # (K*F, F)
    mu = (jnp.einsum('kf,kfg->kg', centers, cov_inv_sqrt).reshape(K * F, 1)
          * inv_sqrt2).astype(jnp.float32)                                    # (K*F, 1)
    gt = jnp.repeat(jnp.eye(K, dtype=jnp.float32), F, axis=1)                 # (K, K*F)

    # ---- tile selection: big N tiles (amortize ~0.35us/step), multiple of 128,
    #      and >= 2 grid steps when possible so the "parallel" axis can shard
    #      across the two TensorCores on v7x.
    tile = max(128, (min(int(tile_n), 8192) // 128) * 128)
    if N > 128:
        tile = min(tile, _round_up(-(-N // 2), 128))
    else:
        tile = 128
    Np = _round_up(N, tile)

    # ---- lane-major layout: points along the 128-lane axis ------------------
    # (layout plumbing only; gives dense loads, (1, tile) lane-dense stores and
    #  cheap sublane logsumexp)
    Xt = X.T                                                                  # (F, N)
    if Np != N:
        Xt = jnp.pad(Xt, ((0, 0), (0, Np - N)))

    out = pl.pallas_call(
        _detector_ke_kernel,
        out_shape=jax.ShapeDtypeStruct((1, Np), jnp.float32),
        grid_spec=pltpu.PrefetchScalarGridSpec(
            num_scalar_prefetch=0,
            grid=(Np // tile,),
            in_specs=[
                pl.BlockSpec((F, tile), lambda i: (0, i)),      # X^T tile
                pl.BlockSpec((K * F, F), lambda i: (0, 0)),     # scaled Cholesky stack
                pl.BlockSpec((K * F, 1), lambda i: (0, 0)),     # scaled projected centers
                pl.BlockSpec((K, K * F), lambda i: (0, 0)),     # segment-sum matrix
                pl.BlockSpec((K, 1), lambda i: (0, 0)),         # coef * exp(-threshold)
            ],
            out_specs=pl.BlockSpec((1, tile), lambda i: (0, i)),
        ),
        compiler_params=pltpu.CompilerParams(
            dimension_semantics=("parallel",),
            vmem_limit_bytes=32 * 1024 * 1024,   # explicit (v5e default scoped is 16 MiB)
        ),
    )(Xt, st, mu, gt, coef_eff)

    return out[0, :N]
    # TODO(synk): full_cov=False (scalar covariance per center) branch and the
    # fit()/kmeans training loop + plotting are host-side / not part of forward.


def detector_ke_reference(X, centers, cov_inv_sqrt, weight, threshold, equal_clusters=True):
    """Pure-JAX reference of DetectorKe.forward (direct (x-c) formulation)."""
    if equal_clusters:
        w = jnp.abs(weight)
        prs = w / jnp.sum(w)
    else:
        prs = jax.nn.softmax(weight)
    cov_inv = jnp.einsum('kfg,khg->kfh', cov_inv_sqrt, cov_inv_sqrt)
    coef = prs * jnp.sqrt(jnp.linalg.det(cov_inv))
    diff = X[:, None, :] - centers[None, :, :]                                # (N, K, F)
    quad = jnp.einsum('nkf,kfg,nkg->nk', diff, cov_inv, diff)
    d = -0.5 * quad
    m = jnp.max(d, axis=1, keepdims=True)
    ll = m[:, 0] + jnp.log(jnp.sum(coef[None, :] * jnp.exp(d - m), axis=1))
    return ll - threshold


if __name__ == "__main__":
    key = jax.random.PRNGKey(0)
    k_x, k_c, k_s = jax.random.split(key, 3)
    N, F, K = 256, 8, 16                       # points, n_features, n_centers

    X = jax.random.normal(k_x, (N, F), dtype=jnp.float32)

    # DetectorKe.__init__ parameter shapes with deterministic init.
    centers = jax.random.uniform(k_c, (K, F), dtype=jnp.float32)       # torch.rand(K, F)
    # cov_inv_sqrt is torch.empty in __init__ (filled by fit()); use a
    # deterministic, well-conditioned stand-in here.
    cov_inv_sqrt = (0.5 * jnp.eye(F, dtype=jnp.float32)[None, :, :]
                    + 0.05 * jax.random.normal(k_s, (K, F, F), dtype=jnp.float32))
    weight = jnp.ones((K,), dtype=jnp.float32)
    # threshold is NaN in __init__ and set by fit(); use 0.0 for a finite demo.
    threshold = jnp.float32(0.0)

    out = jax.block_until_ready(
        detector_ke_forward(X, centers, cov_inv_sqrt, weight, threshold))
    ref = detector_ke_reference(X, centers, cov_inv_sqrt, weight, threshold)

    assert out.shape == (N,)
    assert jnp.allclose(out, ref, atol=1e-3, rtol=1e-3), float(jnp.max(jnp.abs(out - ref)))
    print("KERNEL_OK")
</pallas_src>

<mosaic_0001>
module attributes {stable_mosaic.version = 11 : i64} {
  func.func @_detector_ke_kernel(%arg0: i32, %arg1: memref<8x128xf32, #tpu.memory_space<vmem>>, %arg2: memref<128x8xf32, #tpu.memory_space<vmem>>, %arg3: memref<128x1xf32, #tpu.memory_space<vmem>>, %arg4: memref<16x128xf32, #tpu.memory_space<vmem>>, %arg5: memref<16x1xf32, #tpu.memory_space<vmem>>, %arg6: memref<1x128xf32, #tpu.memory_space<vmem>>) attributes {dimension_semantics = [#tpu.dimension_semantics<parallel>], iteration_bounds = array<i64: 2>, scalar_prefetch = 0 : i64, scratch_operands = 0 : i64, tpu.core_type = #tpu.core_type<tc>, window_params = [{transform_indices = @transform_0, window_bounds = array<i64: 8, 128>}, {pipeline_mode = #tpu.pipeline_mode<synchronous>, transform_indices = @transform_1, window_bounds = array<i64: 128, 8>}, {pipeline_mode = #tpu.pipeline_mode<synchronous>, transform_indices = @transform_2, window_bounds = array<i64: 128, 1>}, {pipeline_mode = #tpu.pipeline_mode<synchronous>, transform_indices = @transform_3, window_bounds = array<i64: 16, 128>}, {pipeline_mode = #tpu.pipeline_mode<synchronous>, transform_indices = @transform_4, window_bounds = array<i64: 16, 1>}, {transform_indices = @transform_5, window_bounds = array<i64: 1, 128>}]} {
    %c0 = arith.constant 0 : index
    %c0_0 = arith.constant 0 : index
    %0 = vector.load %arg2[%c0, %c0_0] : memref<128x8xf32, #tpu.memory_space<vmem>>, vector<128x8xf32>
    %c0_1 = arith.constant 0 : index
    %c0_2 = arith.constant 0 : index
    %1 = vector.load %arg1[%c0_1, %c0_2] : memref<8x128xf32, #tpu.memory_space<vmem>>, vector<8x128xf32>
    %cst = arith.constant dense<0.000000e+00> : vector<128x128xf32>
    %2 = tpu.matmul %0, %1, %cst {dimension_numbers = #tpu.dot_dimension_numbers<[1], [0], [0], [1], [0, 0, 1, 1], [], []>} : vector<128x8xf32>, vector<8x128xf32>, vector<128x128xf32> -> vector<128x128xf32>
    %c0_3 = arith.constant 0 : index
    %c0_4 = arith.constant 0 : index
    %3 = vector.load %arg3[%c0_3, %c0_4] : memref<128x1xf32, #tpu.memory_space<vmem>>, vector<128x1xf32>
    %4 = vector.broadcast %3 : vector<128x1xf32> to vector<128x128xf32>
    %5 = arith.subf %2, %4 : vector<128x128xf32>
    %c0_5 = arith.constant 0 : index
    %c0_6 = arith.constant 0 : index
    %6 = vector.load %arg4[%c0_5, %c0_6] : memref<16x128xf32, #tpu.memory_space<vmem>>, vector<16x128xf32>
    %7 = arith.mulf %5, %5 : vector<128x128xf32>
    %cst_7 = arith.constant dense<0.000000e+00> : vector<16x128xf32>
    %8 = tpu.matmul %6, %7, %cst_7 {dimension_numbers = #tpu.dot_dimension_numbers<[1], [0], [0], [1], [0, 0, 1, 1], [], []>} : vector<16x128xf32>, vector<128x128xf32>, vector<16x128xf32> -> vector<16x128xf32>
    %cst_8 = arith.constant 0.000000e+00 : f32
    %9 = vector.broadcast %cst_8 : f32 to vector<16x128xf32>
    %10 = arith.subf %9, %8 : vector<16x128xf32>
    %cst_9 = arith.constant dense<0xFF800000> : vector<128xf32>
    %11 = vector.multi_reduction <maximumf>, %10, %cst_9 [0] : vector<16x128xf32> to vector<128xf32>
    %12 = vector.shape_cast %11 : vector<128xf32> to vector<1x128xf32>
    %c0_10 = arith.constant 0 : index
    %c0_11 = arith.constant 0 : index
    %13 = vector.load %arg5[%c0_10, %c0_11] : memref<16x1xf32, #tpu.memory_space<vmem>>, vector<16x1xf32>
    %14 = vector.broadcast %12 : vector<1x128xf32> to vector<16x128xf32>
    %15 = arith.subf %10, %14 : vector<16x128xf32>
    %16 = math.exp %15 : vector<16x128xf32>
    %17 = vector.broadcast %13 : vector<16x1xf32> to vector<16x128xf32>
    %18 = arith.mulf %17, %16 : vector<16x128xf32>
    %cst_12 = arith.constant dense<0.000000e+00> : vector<128xf32>
    %19 = vector.multi_reduction <add>, %18, %cst_12 [0] : vector<16x128xf32> to vector<128xf32>
    %20 = vector.shape_cast %19 : vector<128xf32> to vector<1x128xf32>
    %21 = math.log %20 : vector<1x128xf32>
    %22 = arith.addf %12, %21 : vector<1x128xf32>
    %c0_13 = arith.constant 0 : index
    %c0_14 = arith.constant 0 : index
    %23 = vector.load %arg6[%c0_13, %c0_14] : memref<1x128xf32, #tpu.memory_space<vmem>>, vector<1x128xf32>
    tpu.vector_store %arg6[%c0_13, %c0_14], %22 {strides = array<i32>} : memref<1x128xf32, #tpu.memory_space<vmem>>, vector<1x128xf32>,
    return
  }
  func.func @transform_0(%arg0: i32) -> (i32, i32) {
    %c0_i32 = arith.constant 0 : i32
    %c0_i32_0 = arith.constant 0 : i32
    return %c0_i32, %arg0 : i32, i32
  }
  func.func @transform_1(%arg0: i32) -> (i32, i32) {
    %c0_i32 = arith.constant 0 : i32
    %c0_i32_0 = arith.constant 0 : i32
    %c0_i32_1 = arith.constant 0 : i32
    return %c0_i32, %c0_i32_0 : i32, i32
  }
  func.func @transform_2(%arg0: i32) -> (i32, i32) {
    %c0_i32 = arith.constant 0 : i32
    %c0_i32_0 = arith.constant 0 : i32
    %c0_i32_1 = arith.constant 0 : i32
    return %c0_i32, %c0_i32_0 : i32, i32
  }
  func.func @transform_3(%arg0: i32) -> (i32, i32) {
    %c0_i32 = arith.constant 0 : i32
    %c0_i32_0 = arith.constant 0 : i32
    %c0_i32_1 = arith.constant 0 : i32
    return %c0_i32, %c0_i32_0 : i32, i32
  }
  func.func @transform_4(%arg0: i32) -> (i32, i32) {
    %c0_i32 = arith.constant 0 : i32
    %c0_i32_0 = arith.constant 0 : i32
    %c0_i32_1 = arith.constant 0 : i32
    return %c0_i32, %c0_i32_0 : i32, i32
  }
  func.func @transform_5(%arg0: i32) -> (i32, i32) {
    %c0_i32 = arith.constant 0 : i32
    %c0_i32_0 = arith.constant 0 : i32
    return %c0_i32, %arg0 : i32, i32
  }
}

</mosaic_0001>

<bundles_post_ra>
// kernel: tpu_custom_call.1
= control target key start
LH: loop header
LB: loop body
LE: loop exit
PB: predicated region body
PF: predicated region fallthrough
CT: control target
= control target key end

     0   :  { %10 = vsyncpa [#allocation3], 0  ;;  %s995_s0 = inlined_call_operand.vmem [shape: f32[8,256], index: 0, kind: input, shape index: {}]   ;;  %s996_s1 = inlined_call_operand.vmem [shape: f32[128,8], index: 1, kind: input, shape index: {}]   ;;  %s997_s2 = inlined_call_operand.vmem [shape: f32[128,1], index: 2, kind: input, shape index: {}]   ;;  %s998_s3 = inlined_call_operand.vmem [shape: f32[16,128], index: 3, kind: input, shape index: {}]   ;;  %s999_s4 = inlined_call_operand.vmem [shape: f32[16,1], index: 4, kind: input, shape index: {}]   ;;  %s1000_s5 = inlined_call_operand.hbm [shape: f32[1,256], index: 5, kind: output, shape index: {}]  }
   0x1   :  { %12 = vsyncpa [#allocation3 + $0x1], 0  ;;  %s780_s18 = smov 0   ;;  %s782_s19 = smov 0  }
   0x2   :  { %s784_s20 = smov 0   ;;  %s786_s21 = smov 0  }
   0x3 LB: > { %s801_s22 = sadd.s32 4294967295, %s747_s21   ;;  %s611_s23 = sadd.s32 4294967294, %s747_s21   ;;  %s747_s21 = sphi %s786_s21, %s1006_s21   ;;  %s743_s20 = sphi %s784_s20, %s1005_s20   ;;  %s739_s19 = sphi %s782_s19, %s1004_s19   ;;  %s735_s18 = sphi %s780_s18, %s1003_s18  }
   0x4   : > { %s805_s24 = sadd.s32 1, %s747_s21   ;;  %s135_s25 = sadd.s32 1, %s743_s20 }
   0x5   : > { %s132_s26 = ssub.s32 %s747_s21, %s805_s24  ;;  %p145_p0 = scmp.ne.s32.totalorder %s743_s20, %s739_s19 }
   0x6   : > { %p133_p1 = scmp.eq.s32.totalorder %s132_s26, 0  ;;  %p146_p2 = scmp.eq.s32.totalorder %s801_s22, 1 }
   0x7   : > { %p151_p3 = scmp.ne.s32.totalorder %s739_s19, %s735_s18  ;;  %p152_p4 = scmp.eq.s32.totalorder %s611_s23, 1 }
   0x8   : > { %s816_s27 = scalar_select %p133_p1, %s743_s20, %s135_s25  }
   0x9   : > { %p818_p5 = por %p146_p2, %p145_p0  ;;  %p822_p6 = por %p152_p4, %p151_p3 }
   0xa   : > { %p614_p7 = scmp.ge.s32.totalorder %s747_s21, 1  ;;  %p189_p8 = scmp.lt.s32.totalorder %s747_s21, 3 }
   0xc   : > { %p190_p9 = pnand %p614_p7, %p189_p8 }
   0xd   : > { %p215_p10 = scmp.lt.s32.totalorder (!%p190_p9), %s801_s22, 1  ;;  %s213_s23 = sand.u32 (!%p190_p9), 1, %s739_s19  }
   0xe   : > { %193 = sbr.rel (%p190_p9) target bundleno = 417 (0x1a1), region = 40  ;;  %s552_s30 = scalar_lea.hbm (!%p190_p9), %s1000_s5, %s801_s22 }
   0xf   : > { %s214_s6 = scalar_lea.vmem (!%p190_p9), [#allocation2], %s213_s23  ;;  %s556_s8 = sshll.u32 (!%p190_p9), %s552_s30, 4  ;;  %s557_s8 = int_to_ptr.hbm [resolvable:$true] %s556_s8 }
  0x10   : > { %s554_s7 = sshll.u32 (!%p190_p9), %s214_s6, 4  ;;  %s555_s7 = int_to_ptr.vmem [resolvable:$true] %s554_s7 }
  0x13   : > { %v365_v0 = vld [vmem:[%s997_s2 + $0x78] sm:$0xff]  ;;  %v749_v1 = vmov 0   ;;  %v363_v2 = vld [vmem:[%s997_s2 + $0x68] sm:$0xff]  ;;  %s216_s9 = scalar_select %p215_p10, %s801_s22, 1  ;;  %v219_v3 = vld [vmem:[%s996_s1] sm:$0xff]  ;;  %vm236_vm0 = vcmask 64512  }
  0x14   : > { %676 = vset.pattern.permute.xlu0 %v749_v1  ;;  %677 = vset.pattern.permute.xlu1 %v749_v1  ;;  %v225_v5 = vld [vmem:[%s996_s1 + $0x30] sm:$0xff]  ;;  %v231_v6 = vld [vmem:[%s996_s1 + $0x60] sm:$0xff]  ;;  %v361_v9 = vld [vmem:[%s997_s2 + $0x58] sm:$0xff]  ;;  %s705_s22 = scalar_lea.hbm %s1000_s5, 2 }
  0x15   : > { %443 = vperm.xlu0 %676, %v365_v0   ;;  %433 = vperm.xlu1 %677, %v363_v2   ;;  %s615_s10 = sshll.u32 %s216_s9, 3  ;;  %v364_v7 = vld [vmem:[%s997_s2 + $0x70] sm:$0xff]  ;;  %v362_v8 = vld [vmem:[%s997_s2 + $0x60] sm:$0xff]  ;;  %v220_v10 = vld [vmem:[%s996_s1 + $0x8] sm:$0xff]  ;;  %s544_s9 = scalar_lea.sflag [#allocation3], %s213_s23 }
  0x16   : > { %678 = vset.pattern.permute.xlu2 %v749_v1  ;;  %s218_s13 = scalar_lea.vmem %s995_s0, %s615_s10  ;;  %v226_v11 = vld [vmem:[%s996_s1 + $0x38] sm:$0xff]  ;;  %v232_v12 = vld [vmem:[%s996_s1 + $0x68] sm:$0xff]  ;;  %v358_v14 = vld [vmem:[%s997_s2 + $0x40] sm:$0xff]  ;;  %s699_s10 = sshra.s32 %s557_s8, 4  ;;  %s700_s10 = int_to_ptr.hbm [resolvable:$true] %s699_s10 }
  0x17   : > { %v235_v4 = vld [vmem:[%s218_s13] sm:$0xff]  ;;  %423 = vperm.xlu2 %678, %v361_v9   ;;  %v359_v13 = vld [vmem:[%s997_s2 + $0x48] sm:$0xff]  ;;  %v360_v15 = vld [vmem:[%s997_s2 + $0x50] sm:$0xff]  ;;  %s701_s11 = scalar_lea.hbm %s700_s10, 1  ;;  %p706_p0 = scmp.lt.s32.totalorder %s700_s10, %s1000_s5 }
  0x18   : > { %300 = vmatpush.msra.mxu0 %v235_v4  ;;  %634 = vmatpush.msra.mxu2 %v235_v4  ;;  %v221_v16 = vld [vmem:[%s996_s1 + $0x10] sm:$0xff]  ;;  %v227_v17 = vld [vmem:[%s996_s1 + $0x40] sm:$0xff]  ;;  %v355_v20 = vld [vmem:[%s997_s2 + $0x28] sm:$0xff]  ;;  %p702_p11 = scmp.ne.s32.totalorder %s700_s10, %s701_s11  ;;  %p707_p1 = scmp.lt.s32.totalorder %s705_s22, %s701_s11 }
  0x19   : > { %635 = vmatpush.msra.mxu3 %v235_v4  ;;  %616 = vmatmul.msk.f32.vlgmr.msra.gmra.mxu0 %vm236_vm0, %v219_v3  ;;  %v233_v18 = vld [vmem:[%s996_s1 + $0x70] sm:$0xff]  ;;  %v357_v21 = vld [vmem:[%s997_s2 + $0x38] sm:$0xff]  ;;  %v228_v23 = vld [vmem:[%s996_s1 + $0x48] sm:$0xff] }
  0x1a   : > { %622 = vmatmul.msk.f32.vlgmr.msra.gmra.mxu2 %vm236_vm0, %v225_v5  ;;  %628 = vmatmul.msk.f32.vlgmr.msra.gmra.mxu3 %vm236_vm0, %v231_v6  ;;  %v356_v19 = vld [vmem:[%s997_s2 + $0x30] sm:$0xff]  ;;  %v222_v22 = vld [vmem:[%s996_s1 + $0x18] sm:$0xff]  ;;  %v354_v27 = vld [vmem:[%s997_s2 + $0x20] sm:$0xff]  ;;  %p703_p12 = pnand %p702_p11, %p818_p5  ;;  %p708_p2 = por %p707_p1, %p706_p0 }
  0x1b   : > { %v234_v24 = vld [vmem:[%s996_s1 + $0x78] sm:$0xff]  ;;  %v352_v26 = vld [vmem:[%s997_s2 + $0x10] sm:$0xff]  ;;  %v223_v28 = vld [vmem:[%s996_s1 + $0x20] sm:$0xff] }
  0x1c   : > { %v353_v25 = vld [vmem:[%s997_s2 + $0x18] sm:$0xff]  ;;  %v229_v29 = vld [vmem:[%s996_s1 + $0x50] sm:$0xff]  ;;  %v350_v30 = vld [vmem:[%s997_s2] sm:$0xff]  ;;  %p704_p13 = pneg %p703_p12 }
  0x1d   : > { %438 = vperm.xlu0 %676, %v364_v7   ;;  %428 = vperm.xlu1 %677, %v362_v8   ;;  %v512_v31 = vld [vmem:[%s999_s4] sm:$0xff]  ;;  %v351_v32 = vld [vmem:[%s997_s2 + $0x8] sm:$0xff]  ;;  %v230_v34 = vld [vmem:[%s996_s1 + $0x58] sm:$0xff] }
  0x1e   : > { %v224_v33 = vld [vmem:[%s996_s1 + $0x28] sm:$0xff]  ;;  %p709_p3 = pnand %p708_p2, %p704_p13 }
  0x1f   : > { %418 = vperm.xlu2 %678, %v360_v15   ;;  %v513_v35 = vld [vmem:[%s999_s4 + $0x8] sm:$0xff] }
  0x21   : > { %617 = vmatmul.msk.f32.gmra.mxu0 %vm236_vm0, %v220_v10 }
  0x22   : > { %623 = vmatmul.msk.f32.gmra.mxu2 %vm236_vm0, %v226_v11  ;;  %629 = vmatmul.msk.f32.gmra.mxu3 %vm236_vm0, %v232_v12 }
  0x25   : > { %413 = vperm.xlu0 %676, %v359_v13   ;;  %408 = vperm.xlu1 %677, %v358_v14  }
  0x27   : > { %403 = vperm.xlu2 %678, %v357_v21  }
  0x29   : > { %618 = vmatmul.msk.f32.gmra.mxu0 %vm236_vm0, %v221_v16 }
  0x2a   : > { %624 = vmatmul.msk.f32.gmra.mxu2 %vm236_vm0, %v227_v17  ;;  %630 = vmatmul.msk.f32.gmra.mxu3 %vm236_vm0, %v233_v18 }
  0x2d   : > { %398 = vperm.xlu0 %676, %v356_v19   ;;  %393 = vperm.xlu1 %677, %v355_v20  }
  0x2f   : > { %388 = vperm.xlu2 %678, %v354_v27  }
  0x31   : > { %619 = vmatmul.msk.f32.gmra.mxu0 %vm236_vm0, %v222_v22 }
  0x32   : > { %625 = vmatmul.msk.f32.gmra.mxu2 %vm236_vm0, %v228_v23  ;;  %631 = vmatmul.msk.f32.gmra.mxu3 %vm236_vm0, %v234_v24 }
  0x35   : > { %383 = vperm.xlu0 %676, %v353_v25   ;;  %378 = vperm.xlu1 %677, %v352_v26  }
  0x37   : > { %373 = vperm.xlu2 %678, %v351_v32  }
  0x39   : > { %620 = vmatmul.msk.f32.gmra.mxu0 %vm236_vm0, %v223_v28 }
  0x3a   : > { %626 = vmatmul.msk.f32.gmra.mxu2 %vm236_vm0, %v229_v29 }
  0x3d   : > { %368 = vperm.xlu0 %676, %v350_v30   ;;  %522 = vperm.xlu1 %677, %v512_v31  }
  0x3f   : > { %527 = vperm.xlu2 %678, %v513_v35  }
  0x41   : > { %621 = vmatmul.msk.f32.gmra.mxu0 %vm236_vm0, %v224_v33 }
  0x42   : > { %627 = vmatmul.msk.f32.gmra.mxu2 %vm236_vm0, %v230_v34 }
  0x71   : > { %v424_v44 = vpop.permute.xlu2 %423 }
  0x79   : > { %v419_v54 = vpop.permute.xlu2 %418 }
  0x81   : > { %v404_v1 = vpop.permute.xlu2 %403 }
  0x87   : > { %v444_v39 = vpop.permute.xlu0 %443  ;;  %v434_v43 = vpop.permute.xlu1 %433 }
  0x89   : > { %v389_v12 = vpop.permute.xlu2 %388 }
  0x8f   : > { %v439_v47 = vpop.permute.xlu0 %438  ;;  %v429_v53 = vpop.permute.xlu1 %428 }
  0x91   : > { %v374_v26 = vpop.permute.xlu2 %373 }
  0x96   : > { %v951_v36 = vpop.f32.mrf.mxu0 }
  0x97   : > { %v414_v57 = vpop.permute.xlu0 %413  ;;  %v409_v0 = vpop.permute.xlu1 %408 }
  0x9d   : > { %v320_v37 = vpop.f32.mrf.mxu2  ;;  %v338_v38 = vpop.f32.mrf.mxu3 }
  0x9e   : > { %v953_v40 = vpop.f32.mrf.mxu0  ;;  %v458_v59 = vsub.f32 %v338_v38, %v429_v53  ;;  %v463_v38 = vld [vmem:[%s998_s3 + $0x8] sm:$0xff] }
  0x9f   : > { %v399_v2 = vpop.permute.xlu0 %398  ;;  %v394_v11 = vpop.permute.xlu1 %393  ;;  %v447_v31 = vsub.f32 %v953_v40, %v374_v26 }
  0xa0   : > { %v476_v63 = vmul.f32 %v458_v59, %v458_v59  ;;  %v452_v17 = vsub.f32 %v320_v37, %v399_v2  ;;  %v462_v37 = vld [vmem:[%s998_s3] sm:$0xff] }
  0xa1   : > { %v465_v34 = vmul.f32 %v447_v31, %v447_v31 }
  0xa2   : > { %v470_v21 = vmul.f32 %v452_v17, %v452_v17 }
  0xa5   : > { %v323_v41 = vpop.f32.mrf.mxu2  ;;  %v341_v42 = vpop.f32.mrf.mxu3 }
  0xa6   : > { %v308_v48 = vpop.f32.mrf.mxu0  ;;  %v459_v55 = vsub.f32 %v341_v42, %v434_v43  ;;  %v453_v13 = vsub.f32 %v323_v41, %v404_v1 }
  0xa7   : > { %v384_v15 = vpop.permute.xlu0 %383  ;;  %v379_v25 = vpop.permute.xlu1 %378 }
  0xa8   : > { %v477_v61 = vmul.f32 %v459_v55, %v459_v55  ;;  %v471_v19 = vmul.f32 %v453_v13, %v453_v13  ;;  %v448_v27 = vsub.f32 %v308_v48, %v379_v25 }
  0xaa   : > { %v466_v33 = vmul.f32 %v448_v27, %v448_v27 }
  0xad   : > { %v326_v45 = vpop.f32.mrf.mxu2  ;;  %v344_v46 = vpop.f32.mrf.mxu3 }
  0xae   : > { %v460_v51 = vsub.f32 %v344_v46, %v439_v47  ;;  %v311_v58 = vpop.f32.mrf.mxu0  ;;  %v454_v9 = vsub.f32 %v326_v45, %v409_v0 }
  0xaf   : > { %v449_v23 = vsub.f32 %v311_v58, %v384_v15  ;;  %v369_v29 = vpop.permute.xlu0 %368 }
  0xb0   : > { %v478_v60 = vmul.f32 %v460_v51, %v460_v51  ;;  %v472_v18 = vmul.f32 %v454_v9, %v454_v9  ;;  %v446_v32 = vsub.f32 %v951_v36, %v369_v29 }
  0xb1   : > { %v467_v30 = vmul.f32 %v449_v23, %v449_v23 }
  0xb2   : > { %v464_v35 = vmul.f32 %v446_v32, %v446_v32 }
  0xb5   : > { %v329_v49 = vpop.f32.mrf.mxu2  ;;  %v347_v50 = vpop.f32.mrf.mxu3 }
  0xb6   : > { %v461_v52 = vsub.f32 %v347_v50, %v444_v39  ;;  %v314_v3 = vpop.f32.mrf.mxu0  ;;  %v455_v7 = vsub.f32 %v329_v49, %v414_v57 }
  0xb7   : > { %v450_v22 = vsub.f32 %v314_v3, %v389_v12 }
  0xb8   : > { %v479_v56 = vmul.f32 %v461_v52, %v461_v52  ;;  %v473_v14 = vmul.f32 %v455_v7, %v455_v7 }
  0xb9   : > { %v468_v28 = vmul.f32 %v450_v22, %v450_v22 }
  0xba   : > { %480 = vmatpush.msra.mxu1 %v479_v56  ;;  %v528_v56 = vpop.permute.xlu2 %527 }
  0xbc   : > { %481 = vmatpush.msra.mxu1 %v478_v60 }
  0xbd   : > { %v332_v62 = vpop.f32.mrf.mxu2 }
  0xbe   : > { %482 = vmatpush.msra.mxu1 %v477_v61  ;;  %v456_v5 = vsub.f32 %v332_v62, %v419_v54  ;;  %v317_v16 = vpop.f32.mrf.mxu0  ;;  %v523_v54 = vpop.permute.xlu1 %522 }
  0xbf   : > { %v451_v20 = vsub.f32 %v317_v16, %v394_v11 }
  0xc0   : > { %483 = vmatpush.msra.mxu1 %v476_v63  ;;  %v474_v10 = vmul.f32 %v456_v5, %v456_v5 }
  0xc1   : > { %v469_v24 = vmul.f32 %v451_v20, %v451_v20 }
  0xc5   : > { %v335_v4 = vpop.f32.mrf.mxu2 }
  0xc6   : > { %v457_v6 = vsub.f32 %v335_v4, %v424_v44 }
  0xc8   : > { %v475_v8 = vmul.f32 %v457_v6, %v457_v6 }
  0xca   : > { %484 = vmatpush.msra.mxu1 %v475_v8 }
  0xcc   : > { %485 = vmatpush.msra.mxu1 %v474_v10 }
  0xce   : > { %486 = vmatpush.msra.mxu1 %v473_v14 }
  0xd0   : > { %487 = vmatpush.msra.mxu1 %v472_v18 }
  0xd2   : > { %488 = vmatpush.msra.mxu1 %v471_v19 }
  0xd4   : > { %489 = vmatpush.msra.mxu1 %v470_v21 }
  0xd6   : > { %490 = vmatpush.msra.mxu1 %v469_v24 }
  0xd8   : > { %491 = vmatpush.msra.mxu1 %v468_v28 }
  0xda   : > { %492 = vmatpush.msra.mxu1 %v467_v30 }
  0xdc   : > { %493 = vmatpush.msra.mxu1 %v466_v33 }
  0xde   : > { %494 = vmatpush.msra.mxu1 %v465_v34 }
  0xe0   : > { %495 = vmatpush.msra.mxu1 %v464_v35 }
  0xe1   : > { %496 = vmatmul.f32.vlgmr.msra.gmra.mxu1 %v462_v37 }
  0xe9   : > { %499 = vmatmul.f32.gmra.mxu1 %v463_v38 }
 0x15e   : > { %v497_v39 = vpop.f32.mrf.mxu1 }
 0x15f   : > { %v503_v36 = vsub.f32 0.0, %v497_v39 }
 0x166   : > { %v500_v40 = vpop.f32.mrf.mxu1 }
 0x167   : > { %v504_v41 = vsub.f32 0.0, %v500_v40 }
 0x169   : > { %v505_v42 = vmax.f32 %v503_v36, %v504_v41 }
 0x16b   : > { %v506_v43 = vrot.slane %v505_v42, 4 }
 0x16d   : > { %v507_v44 = vmax.f32 %v505_v42, %v506_v43 }
 0x16f   : > { %v508_v45 = vrot.slane %v507_v44, 2 }
 0x171   : > { %v509_v46 = vmax.f32 %v507_v44, %v508_v45 }
 0x173   : > { %v510_v47 = vrot.slane %v509_v46, 1 }
 0x175   : > { %v511_v48 = vmax.f32 %v509_v46, %v510_v47 }
 0x177   : > { %v514_v49 = vsub.f32 %v503_v36, %v511_v48  ;;  %v515_v50 = vsub.f32 %v504_v41, %v511_v48 }
 0x179   : > { %v516_v51 = vmul.f32 1.442695, %v514_v49  ;;  %v518_v52 = vmul.f32 1.442695, %v515_v50 }
 0x17b   : > { %679 = vpow2.f32 %v516_v51 }
 0x17c   : > { %681 = vpow2.f32 %v518_v52 }
 0x181   : > { %v680_v53 = vpop.eup %679 }
 0x182   : > { %v682_v55 = vpop.eup %681  ;;  %v530_v57 = vmul.f32 %v680_v53, %v523_v54 }
 0x183   : > { %v531_v58 = vmul.f32 %v682_v55, %v528_v56 }
 0x185   : > { %v532_v59 = vadd.f32 %v531_v58, %v530_v57 }
 0x187   : > { %v533_v60 = vrot.slane %v532_v59, 4 }
 0x189   : > { %v534_v61 = vadd.f32 %v533_v60, %v532_v59 }
 0x18b   : > { %v535_v62 = vrot.slane %v534_v61, 2 }
 0x18d   : > { %v536_v63 = vadd.f32 %v535_v62, %v534_v61 }
 0x18f   : > { %v537_v0 = vrot.slane %v536_v63, 1 }
 0x191   : > { %v538_v1 = vadd.f32 %v537_v0, %v536_v63 }
 0x193   : > { %683 = vlog2.f32 %v538_v1 }
 0x199   : > { %v684_v2 = vpop.eup %683 }
 0x19a   : > { %v540_v3 = vmul.f32 0.6931472, %v684_v2 }
 0x19c   : > { %v541_v4 = vadd.f32 %v540_v3, %v511_v48 }
 0x19e   : > { %542 = vst [vmem:[%s214_s6] sm:$0x1] %v541_v4 }
 0x19f   : > { %712 = shalt.err (!%p709_p3)
}
 0x1a0   : > { %636 = dma.vmem_to_hbm [thread:$0]  (%p818_p5), %s555_s7, 16, %s557_s8, %s544_s9  }
 0x1a1 PF: > { %p642_p4 = scmp.ge.s32.totalorder %s747_s21, 2  ;;  %s568_s16 = sand.u32 1, %s735_s18  }
 0x1a2   : > { %s569_s17 = scalar_lea.sflag [#allocation3], %s568_s16 }
 0x1a3   : > { %p639_p7 = pnand %p642_p4, %p822_p6 }
 0x1a5   : > { %p640_p8 = pneg %p639_p7 }
 0x1a7   : > { %730 = dma.done.wait (%p640_p8), %s569_s17, 16  }
 0x1a8   : > { %732 = vsyncadd (%p640_p8), %s569_s17, 4294967280  ;;  %p15_p9 = scmp.ge.s32.totalorder %s805_s24, 4   ;;  %s1003_s18 = smov %s739_s19 }
 0x1a9   : > { %s1004_s19 = smov %s743_s20  ;;  %s1005_s20 = smov %s816_s27 }
 0x1aa   : > { %s1006_s21 = smov %s805_s24  ;;  %17 = sbr.rel (!%p15_p9) target bundleno = 3 (0x3), region = 75 }
 0x1af   :  { %574 = vsyncpa [#allocation3], 1 }
 0x1b0   :  { %576 = vsyncpa [#allocation3 + $0x1], 1 }

</bundles_post_ra>
